<compile_context>
chip_gen: v5e
topology: v5e:2x2
jax: 0.10.0
libtpu: 0.0.40
codegen_flags: <defaults>
</compile_context>

<pallas_src>
import jax
import jax.numpy as jnp
from jax.experimental import pallas as pl
from jax.experimental.pallas import tpu as pltpu

_LANES = 128
_ROW_W = 3 * _LANES          # 384 interleaved floats per row of 128 points

# 1024 rows x 128 points x ~16 B/point ~= 2 MiB of HBM traffic per grid step:
# past the measured roofline knee, modest double-buffered VMEM footprint, and
# enough grid steps for v7x core sharding at medium N.   (was 2048)
_MAX_TILE_ROWS = 1024

# Below this many points a single fused XLA elementwise op beats the
# pallas_call launch + layout plumbing.
_SMALL_N_FALLBACK = 128 * 1024


# ----------------------------------------------------------------------------
# Kernels
# ----------------------------------------------------------------------------
def _box_sdf_planar_kernel(c_ref, h_ref, p_ref, o_ref):
    """SoA fast path.  p_ref: (3, TR, 128) x/y/z planes; o_ref: (TR, 128)."""
    dx = jnp.abs(p_ref[0] - c_ref[0]) - h_ref[0]
    dy = jnp.abs(p_ref[1] - c_ref[1]) - h_ref[1]
    dz = jnp.abs(p_ref[2] - c_ref[2]) - h_ref[2]

    qx = jnp.maximum(dx, 0.0)
    qy = jnp.maximum(dy, 0.0)
    qz = jnp.maximum(dz, 0.0)
    outside = jnp.sqrt(qx * qx + qy * qy + qz * qz)
    inside = jnp.minimum(jnp.maximum(jnp.maximum(dx, dy), dz), 0.0)
    o_ref[...] = outside + inside


def _box_sdf_interleaved_kernel(c_ref, h_ref, sel_ref, p_ref, o_ref):
    """AoS path.  p_ref: (TR, 384) of interleaved x,y,z,x,y,z,... floats.

    De-interleaving happens in-kernel (no extra HBM pass):
      * c_ref / h_ref are lane-periodic (1, 384) rows [cx,cy,cz,cx,...],
      * two XLU rolls (shift +1 and +383 == -1) guarantee that at every
        "middle" lane 3k+1 the set {d0, d1, d2} equals {dx_k, dy_k, dz_k}
        regardless of the rotate sign convention — all downstream math is
        symmetric in the three coordinates, so the result at lane 3k+1 is
        exactly point k's signed distance,
      * one MXU matmul with a constant 0/1 selection matrix compacts the
        stride-3 valid lanes into a dense, lane-aligned (TR, 128) output.
    """
    d0 = jnp.abs(p_ref[...] - c_ref[...]) - h_ref[...]   # (TR, 384)
    d1 = pltpu.roll(d0, shift=1, axis=1)                 # one neighbour coord
    d2 = pltpu.roll(d0, shift=_ROW_W - 1, axis=1)        # the other neighbour

    q0 = jnp.maximum(d0, 0.0)
    q1 = jnp.maximum(d1, 0.0)
    q2 = jnp.maximum(d2, 0.0)
    outside = jnp.sqrt(q0 * q0 + q1 * q1 + q2 * q2)
    inside = jnp.minimum(jnp.maximum(jnp.maximum(d0, d1), d2), 0.0)
    sd_all = outside + inside                             # valid at lanes 3k+1

    # Compact stride-3 valid lanes -> dense 128-wide slab on the idle MXU.
    o_ref[...] = jnp.dot(sd_all, sel_ref[...],
                         preferred_element_type=jnp.float32)


# ----------------------------------------------------------------------------
# Tiling / helpers
# ----------------------------------------------------------------------------
def _choose_tiling(rows_needed):
    """Pick (tile_rows, grid_steps) with bounded padding (<8 rows per step plus
    the lane remainder) and an even step count so v7x's two TensorCores split
    the ("parallel",) grid axis.  Extra steps cost ~0.35us each — negligible."""
    rows_needed = max(int(rows_needed), 1)
    steps = pl.cdiv(rows_needed, _MAX_TILE_ROWS)
    if rows_needed >= 16:                       # enough work to split in two
        steps = 2 * pl.cdiv(steps, 2)
    tile_rows = 8 * pl.cdiv(pl.cdiv(rows_needed, steps), 8)
    tile_rows = int(min(_MAX_TILE_ROWS, max(8, tile_rows)))
    grid_steps = int(pl.cdiv(rows_needed, tile_rows))
    return tile_rows, grid_steps


def _selection_matrix():
    # (384, 128) f32 with S[3k+1, k] = 1: picks each point's "middle" lane.
    rows = jnp.arange(_ROW_W, dtype=jnp.int32)[:, None]
    cols = jnp.arange(_LANES, dtype=jnp.int32)[None, :]
    return (rows == 3 * cols + 1).astype(jnp.float32)


def _compiler_params():
    return pltpu.CompilerParams(
        dimension_semantics=("parallel",),
        # Headroom only: 1024-row tiles fit comfortably, this just keeps the
        # v5e 16 MiB default scoped-VMEM limit from ever being the binding
        # constraint (physical VMEM: 128 MiB v5e/v6e, 64 MiB per-TC v7x).
        vmem_limit_bytes=32 * 1024 * 1024,
    )


def _run_planar(planar, c, half, tile_rows, grid_steps):
    rows_pad = planar.shape[1]
    return pl.pallas_call(
        _box_sdf_planar_kernel,
        out_shape=jax.ShapeDtypeStruct((rows_pad, _LANES), jnp.float32),
        grid_spec=pltpu.PrefetchScalarGridSpec(
            num_scalar_prefetch=0,
            grid=(grid_steps,),
            in_specs=[
                pl.BlockSpec(memory_space=pltpu.MemorySpace.SMEM),   # center
                pl.BlockSpec(memory_space=pltpu.MemorySpace.SMEM),   # half side
                pl.BlockSpec((3, tile_rows, _LANES), lambda i: (0, i, 0)),
            ],
            out_specs=pl.BlockSpec((tile_rows, _LANES), lambda i: (i, 0)),
        ),
        compiler_params=_compiler_params(),
    )(c, half, planar)


def _run_interleaved(rows2d, c_row, h_row, sel, tile_rows, grid_steps):
    rows_pad = rows2d.shape[0]
    return pl.pallas_call(
        _box_sdf_interleaved_kernel,
        out_shape=jax.ShapeDtypeStruct((rows_pad, _LANES), jnp.float32),
        grid_spec=pltpu.PrefetchScalarGridSpec(
            num_scalar_prefetch=0,
            grid=(grid_steps,),
            in_specs=[
                # Tiny lane-periodic constants + selection matrix: constant
                # block index => fetched once, not re-DMA'd per step.
                pl.BlockSpec((1, _ROW_W), lambda i: (0, 0)),
                pl.BlockSpec((1, _ROW_W), lambda i: (0, 0)),
                pl.BlockSpec((_ROW_W, _LANES), lambda i: (0, 0)),
                pl.BlockSpec((tile_rows, _ROW_W), lambda i: (i, 0)),
            ],
            out_specs=pl.BlockSpec((tile_rows, _LANES), lambda i: (i, 0)),
        ),
        compiler_params=_compiler_params(),
    )(c_row, h_row, sel, rows2d)


# ----------------------------------------------------------------------------
# Public API
# ----------------------------------------------------------------------------
def _box_sdf_reference(sample_points, center, side_lengths):
    """Pure-jnp transcription of BoxSDF.forward (also the small-N fallback)."""
    p = jnp.asarray(sample_points, jnp.float32).reshape(-1, 3)
    diff = (jnp.abs(p - jnp.asarray(center, jnp.float32).reshape(1, 3))
            - jnp.asarray(side_lengths, jnp.float32).reshape(1, 3) / 2.0)
    sd = (jnp.linalg.norm(jnp.maximum(diff, 0.0), axis=-1)
          + jnp.minimum(jnp.max(diff, axis=-1), 0.0))
    return sd[:, None]


def box_sdf(sample_points, center, side_lengths, *,
            min_kernel_points=_SMALL_N_FALLBACK):
    """Module-faithful entry point: sample_points (..., 3) -> (N, 1) SDF."""
    pts = jnp.asarray(sample_points, jnp.float32).reshape(-1, 3)
    n = pts.shape[0]
    if n == 0 or n < min_kernel_points:
        # Tiny inputs: one fused XLA elementwise op beats any pallas_call.
        return _box_sdf_reference(pts, center, side_lengths)

    c = jnp.asarray(center, jnp.float32).reshape(3)
    half = jnp.asarray(side_lengths, jnp.float32).reshape(3) * 0.5
    c_row = jnp.tile(c, _LANES).reshape(1, _ROW_W)      # [cx,cy,cz,cx,cy,cz,...]
    h_row = jnp.tile(half, _LANES).reshape(1, _ROW_W)

    rows_needed = pl.cdiv(n, _LANES)
    tile_rows, grid_steps = _choose_tiling(rows_needed)
    rows_pad = tile_rows * grid_steps
    n_pad = rows_pad * _LANES

    flat = pts.reshape(-1)                    # free view, stays interleaved
    if n_pad != n:                            # pad only when not tile-aligned
        flat = jnp.pad(flat, (0, 3 * (n_pad - n)))
    rows2d = flat.reshape(rows_pad, _ROW_W)   # free reshape (row-major)

    out = _run_interleaved(rows2d, c_row, h_row, _selection_matrix(),
                           tile_rows, grid_steps)

    if n_pad != n:                            # slice only when padding was added
        return out.reshape(-1)[:n].reshape(n, 1)
    return out.reshape(n, 1)


def box_sdf_planar(points_planar, center, side_lengths):
    """Preferred fast path: the producer supplies SoA points as (3, R, 128)
    float32 with R % 8 == 0 (x/y/z planes).  Returns (R, 128) signed distances
    in the same point order, consumed with zero layout pre-pass."""
    p = jnp.asarray(points_planar, jnp.float32)
    if p.ndim != 3 or p.shape[0] != 3 or p.shape[2] != _LANES or p.shape[1] % 8:
        raise ValueError("points_planar must have shape (3, R, 128) with R % 8 == 0")
    rows = p.shape[1]
    tile_rows, grid_steps = _choose_tiling(rows)
    rows_pad = tile_rows * grid_steps
    if rows_pad != rows:                      # only for tile-unfriendly R
        p = jnp.pad(p, ((0, 0), (0, rows_pad - rows), (0, 0)))
    c = jnp.asarray(center, jnp.float32).reshape(3)
    half = jnp.asarray(side_lengths, jnp.float32).reshape(3) * 0.5
    out = _run_planar(p, c, half, tile_rows, grid_steps)
    return out[:rows] if rows_pad != rows else out


# ----------------------------------------------------------------------------
# Demo / self-check
# ----------------------------------------------------------------------------
if __name__ == "__main__":
    key = jax.random.PRNGKey(0)

    # "ray_bundle.sample_points": (batch=2, H=16, W=16, 3)  ->  N = 512 points
    sample_points = jax.random.normal(key, (2, 16, 16, 3), dtype=jnp.float32) * 2.0

    # cfg.center.val / cfg.side_lengths.val, shape (1, 3) like the Parameters
    center = jnp.array([[0.25, -0.1, 0.3]], dtype=jnp.float32)
    side_lengths = jnp.array([[1.0, 1.5, 2.0]], dtype=jnp.float32)

    ref = _box_sdf_reference(sample_points, center, side_lengths)

    # 1) Module-faithful AoS entry point, forced onto the Pallas kernel
    #    (the default would take the small-N XLA fallback at this size).
    sd = box_sdf(sample_points, center, side_lengths, min_kernel_points=0)
    sd = jax.block_until_ready(sd)
    assert sd.shape == (512, 1)
    assert jnp.allclose(sd, ref, atol=1e-5, rtol=1e-5)

    # 2) Planar (SoA) fast path: "producer" hands in (3, R, 128) directly.
    pts = sample_points.reshape(-1, 3)
    n = pts.shape[0]
    rows = 8 * pl.cdiv(pl.cdiv(n, _LANES), 8)
    pts_pad = jnp.pad(pts, ((0, rows * _LANES - n), (0, 0)))
    planar = pts_pad.T.reshape(3, rows, _LANES)
    sd_planar = jax.block_until_ready(box_sdf_planar(planar, center, side_lengths))
    assert jnp.allclose(sd_planar.reshape(-1)[:n, None], ref, atol=1e-5, rtol=1e-5)

    # 3) Default entry point (small N -> fused XLA fallback).
    sd_fb = jax.block_until_ready(box_sdf(sample_points, center, side_lengths))
    assert jnp.allclose(sd_fb, ref, atol=1e-5, rtol=1e-5)

    print("KERNEL_OK")
</pallas_src>

<mosaic_0001>
module attributes {stable_mosaic.version = 11 : i64} {
  func.func @_box_sdf_interleaved_kernel(%arg0: i32, %arg1: memref<1x384xf32, #tpu.memory_space<vmem>>, %arg2: memref<1x384xf32, #tpu.memory_space<vmem>>, %arg3: memref<384x128xf32, #tpu.memory_space<vmem>>, %arg4: memref<8x384xf32, #tpu.memory_space<vmem>>, %arg5: memref<8x128xf32, #tpu.memory_space<vmem>>) attributes {dimension_semantics = [#tpu.dimension_semantics<parallel>], iteration_bounds = array<i64: 1>, scalar_prefetch = 0 : i64, scratch_operands = 0 : i64, tpu.core_type = #tpu.core_type<tc>, window_params = [{pipeline_mode = #tpu.pipeline_mode<synchronous>, transform_indices = @transform_0, window_bounds = array<i64: 1, 384>}, {pipeline_mode = #tpu.pipeline_mode<synchronous>, transform_indices = @transform_1, window_bounds = array<i64: 1, 384>}, {pipeline_mode = #tpu.pipeline_mode<synchronous>, transform_indices = @transform_2, window_bounds = array<i64: 384, 128>}, {transform_indices = @transform_3, window_bounds = array<i64: 8, 384>}, {transform_indices = @transform_4, window_bounds = array<i64: 8, 128>}]} {
    %c0 = arith.constant 0 : index
    %c0_0 = arith.constant 0 : index
    %0 = vector.load %arg4[%c0, %c0_0] : memref<8x384xf32, #tpu.memory_space<vmem>>, vector<8x384xf32>
    %c0_1 = arith.constant 0 : index
    %c0_2 = arith.constant 0 : index
    %1 = vector.load %arg1[%c0_1, %c0_2] : memref<1x384xf32, #tpu.memory_space<vmem>>, vector<1x384xf32>
    %2 = vector.broadcast %1 : vector<1x384xf32> to vector<8x384xf32>
    %3 = arith.subf %0, %2 : vector<8x384xf32>
    %4 = math.absf %3 : vector<8x384xf32>
    %c0_3 = arith.constant 0 : index
    %c0_4 = arith.constant 0 : index
    %5 = vector.load %arg2[%c0_3, %c0_4] : memref<1x384xf32, #tpu.memory_space<vmem>>, vector<1x384xf32>
    %6 = vector.broadcast %5 : vector<1x384xf32> to vector<8x384xf32>
    %7 = arith.subf %4, %6 : vector<8x384xf32>
    %c1_i32 = arith.constant 1 : i32
    %8 = tpu.dynamic_rotate %7 by %c1_i32 dim 1 : vector<8x384xf32>, i32 -> vector<8x384xf32>
    %c383_i32 = arith.constant 383 : i32
    %9 = tpu.dynamic_rotate %7 by %c383_i32 dim 1 : vector<8x384xf32>, i32 -> vector<8x384xf32>
    %cst = arith.constant 0.000000e+00 : f32
    %10 = vector.broadcast %cst : f32 to vector<8x384xf32>
    %11 = arith.maximumf %7, %10 : vector<8x384xf32>
    %cst_5 = arith.constant 0.000000e+00 : f32
    %12 = vector.broadcast %cst_5 : f32 to vector<8x384xf32>
    %13 = arith.maximumf %8, %12 : vector<8x384xf32>
    %cst_6 = arith.constant 0.000000e+00 : f32
    %14 = vector.broadcast %cst_6 : f32 to vector<8x384xf32>
    %15 = arith.maximumf %9, %14 : vector<8x384xf32>
    %16 = arith.mulf %11, %11 : vector<8x384xf32>
    %17 = arith.mulf %13, %13 : vector<8x384xf32>
    %18 = arith.addf %16, %17 : vector<8x384xf32>
    %19 = arith.mulf %15, %15 : vector<8x384xf32>
    %20 = arith.addf %18, %19 : vector<8x384xf32>
    %21 = math.sqrt %20 : vector<8x384xf32>
    %22 = arith.maximumf %7, %8 : vector<8x384xf32>
    %23 = arith.maximumf %22, %9 : vector<8x384xf32>
    %cst_7 = arith.constant 0.000000e+00 : f32
    %24 = vector.broadcast %cst_7 : f32 to vector<8x384xf32>
    %25 = arith.minimumf %23, %24 : vector<8x384xf32>
    %26 = arith.addf %21, %25 : vector<8x384xf32>
    %c0_8 = arith.constant 0 : index
    %c0_9 = arith.constant 0 : index
    %27 = vector.load %arg3[%c0_8, %c0_9] : memref<384x128xf32, #tpu.memory_space<vmem>>, vector<384x128xf32>
    %cst_10 = arith.constant dense<0.000000e+00> : vector<8x128xf32>
    %28 = tpu.matmul %26, %27, %cst_10 {dimension_numbers = #tpu.dot_dimension_numbers<[1], [0], [0], [1], [0, 0, 1, 1], [], []>} : vector<8x384xf32>, vector<384x128xf32>, vector<8x128xf32> -> vector<8x128xf32>
    %c0_11 = arith.constant 0 : index
    %c0_12 = arith.constant 0 : index
    %29 = vector.load %arg5[%c0_11, %c0_12] : memref<8x128xf32, #tpu.memory_space<vmem>>, vector<8x128xf32>
    tpu.vector_store %arg5[%c0_11, %c0_12], %28 {strides = array<i32>} : memref<8x128xf32, #tpu.memory_space<vmem>>, vector<8x128xf32>,
    return
  }
  func.func @transform_0(%arg0: i32) -> (i32, i32) {
    %c0_i32 = arith.constant 0 : i32
    %c0_i32_0 = arith.constant 0 : i32
    %c0_i32_1 = arith.constant 0 : i32
    return %c0_i32, %c0_i32_0 : i32, i32
  }
  func.func @transform_1(%arg0: i32) -> (i32, i32) {
    %c0_i32 = arith.constant 0 : i32
    %c0_i32_0 = arith.constant 0 : i32
    %c0_i32_1 = arith.constant 0 : i32
    return %c0_i32, %c0_i32_0 : i32, i32
  }
  func.func @transform_2(%arg0: i32) -> (i32, i32) {
    %c0_i32 = arith.constant 0 : i32
    %c0_i32_0 = arith.constant 0 : i32
    %c0_i32_1 = arith.constant 0 : i32
    return %c0_i32, %c0_i32_0 : i32, i32
  }
  func.func @transform_3(%arg0: i32) -> (i32, i32) {
    %c0_i32 = arith.constant 0 : i32
    %c0_i32_0 = arith.constant 0 : i32
    return %arg0, %c0_i32 : i32, i32
  }
  func.func @transform_4(%arg0: i32) -> (i32, i32) {
    %c0_i32 = arith.constant 0 : i32
    %c0_i32_0 = arith.constant 0 : i32
    return %arg0, %c0_i32 : i32, i32
  }
}

</mosaic_0001>

<bundles_post_ra>
// kernel: tpu_custom_call.1
= control target key start
LH: loop header
LB: loop body
LE: loop exit
PB: predicated region body
PF: predicated region fallthrough
CT: control target
= control target key end

     0   :  { %9 = vsyncpa [#allocation3], 0  ;;  %s555_s0 = inlined_call_operand.hbm [shape: f32[1,384], index: 0, kind: input, shape index: {}]   ;;  %s556_s1 = inlined_call_operand.hbm [shape: f32[1,384], index: 1, kind: input, shape index: {}]   ;;  %s557_s2 = inlined_call_operand.hbm [shape: f32[384,128], index: 2, kind: input, shape index: {}]   ;;  %s558_s3 = inlined_call_operand.hbm [shape: f32[8,384], index: 3, kind: input, shape index: {}]   ;;  %s559_s4 = inlined_call_operand.hbm [shape: f32[8,128], index: 4, kind: output, shape index: {}]  }
   0x1   :  { %10 = vsyncpa [#allocation6], 0 }
   0x2   :  { %11 = vsyncpa [#allocation9], 0  ;;  %s29_s17 = sshll.u32 %s556_s1, 4  ;;  %s30_s17 = int_to_ptr.hbm [resolvable:$true] %s29_s17 }
   0x3   :  { %12 = vsyncpa [#allocation4], 0  ;;  %s468_s18 = smov [#allocation5]   ;;  %s18_s22 = sshll.u32 %s555_s0, 4  ;;  %s19_s22 = int_to_ptr.hbm [resolvable:$true] %s18_s22 }
   0x4   :  { %s31_s19 = sshll.u32 %s468_s18, 4  ;;  %s469_s23 = smov [#allocation2]   ;;  %s32_s19 = int_to_ptr.vmem [resolvable:$true] %s31_s19 }
   0x5   :  { %34 = dma.hbm_to_vmem [thread:$0]  %s30_s17, 48, %s32_s19, [#allocation6]  }
   0x6   :  { %s20_s24 = sshll.u32 %s469_s23, 4  ;;  %s39_s27 = sshll.u32 %s557_s2, 4  ;;  %s21_s24 = int_to_ptr.vmem [resolvable:$true] %s20_s24  ;;  %s40_s27 = int_to_ptr.hbm [resolvable:$true] %s39_s27 }
   0x7   :  { %23 = dma.hbm_to_vmem [thread:$0]  %s19_s22, 48, %s21_s24, [#allocation3]  }
   0x8   :  { %s470_s1 = smov [#allocation7]   ;;  %s53_s5 = sshll.u32 %s558_s3, 4  ;;  %s54_s5 = int_to_ptr.hbm [resolvable:$true] %s53_s5 }
   0x9   :  { %s41_s28 = sshll.u32 %s470_s1, 4  ;;  %s471_s6 = smov 128   ;;  %s42_s28 = int_to_ptr.vmem [resolvable:$true] %s41_s28 }
   0xa   :  { %s472_s0 = smov 8   ;;  %s473_s7 = smov [#allocation8]  }
   0xb   :  { %47 = dma.hbm_to_vmem [thread:$0]  %s40_s27, 6144, %s42_s28, [#allocation6], %s471_s6, %s471_s6, %s472_s0  }
   0xc   :  { %s55_s8 = sshll.u32 %s473_s7, 4  ;;  %s56_s8 = int_to_ptr.vmem [resolvable:$true] %s55_s8 }
   0xd   :  { %58 = dma.hbm_to_vmem [thread:$0]  %s54_s5, 384, %s56_s8, [#allocation9]  }
   0xe   :  { %460 = dma.done.wait [#allocation3], 48  }
   0xf   :  { %461 = vsyncadd [#allocation3], 4294967248 }
  0x10   :  { %462 = dma.done.wait [#allocation6], 6192  }
  0x11   :  { %463 = vsyncadd [#allocation6], 4294961104 }
  0x12   :  { %464 = dma.done.wait [#allocation9], 384  }
  0x13   :  { %465 = vsyncadd [#allocation9], 4294966912  ;;  %v76_v0 = vld [vmem:[#allocation8 + $0x8] sm:$0xff]  ;;  %v78_v1 = vld [vmem:[#allocation2] sm:$0x7]  ;;  %s474_s2 = smov 1   ;;  %v109_v42 = vlaneseq }
  0x14   :  { %v92_v2 = vld [vmem:[#allocation5] sm:$0x7]  ;;  %v81_v3 = vperm.slane %v78_v1, 1  ;;  %v75_v4 = vld [vmem:[#allocation8] sm:$0xff]  ;;  %v80_v5 = vperm.slane %v78_v1, 0  ;;  %v77_v6 = vld [vmem:[#allocation8 + $0x10] sm:$0xff] }
  0x15   :  { %v82_v7 = vperm.slane %v78_v1, 2  ;;  %v95_v9 = vperm.slane %v92_v2, 1  ;;  %v94_v11 = vperm.slane %v92_v2, 0  ;;  %s475_s3 = smov 127   ;;  %v96_v18 = vperm.slane %v92_v2, 2  ;;  %v228_v20 = vld [vmem:[#allocation7 + $0xf8] sm:$0xff] }
  0x16   :  { %v87_v8 = vsub.f32 %v76_v0, %v81_v3  ;;  %v86_v10 = vsub.f32 %v75_v4, %v80_v5  ;;  %265 = vmatpush.msra.mxu1 %v228_v20  ;;  %v212_v21 = vld [vmem:[#allocation7 + $0x78] sm:$0xff]  ;;  %v227_v22 = vld [vmem:[#allocation7 + $0xf0] sm:$0xff]  ;;  %v226_v25 = vld [vmem:[#allocation7 + $0xe8] sm:$0xff]  ;;  %v526_v50 = vand.u32 127, %v109_v42  ;;  %s476_s9 = smov [#allocation10]   ;;  %s313_s13 = sshll.u32 %s559_s4, 4  ;;  %s314_s13 = int_to_ptr.hbm [resolvable:$true] %s313_s13 }
  0x17   :  { %v88_v14 = vsub.f32 %v77_v6, %v82_v7  ;;  %v244_v23 = vld [vmem:[#allocation7 + $0x178] sm:$0xff]  ;;  %245 = vmatpush.msra.mxu0 %v212_v21  ;;  %v211_v24 = vld [vmem:[#allocation7 + $0x70] sm:$0xff]  ;;  %v210_v27 = vld [vmem:[#allocation7 + $0x68] sm:$0xff]  ;;  %s311_s10 = sshll.u32 %s476_s9, 4  ;;  %s312_s10 = int_to_ptr.vmem [resolvable:$true] %s311_s10 }
  0x18   :  { %v90_v12 = vand.u32 2147483647, %v87_v8  ;;  %v89_v13 = vand.u32 2147483647, %v86_v10  ;;  %266 = vmatpush.msra.mxu1 %v227_v22  ;;  %285 = vmatpush.msra.mxu2 %v244_v23  ;;  %v243_v26 = vld [vmem:[#allocation7 + $0x170] sm:$0xff]  ;;  %v225_v28 = vld [vmem:[#allocation7 + $0xe0] sm:$0xff] }
  0x19   :  { %v91_v17 = vand.u32 2147483647, %v88_v14  ;;  %246 = vmatpush.msra.mxu0 %v211_v24  ;;  %v242_v29 = vld [vmem:[#allocation7 + $0x168] sm:$0xff]  ;;  %v209_v30 = vld [vmem:[#allocation7 + $0x60] sm:$0xff]  ;;  %v224_v31 = vld [vmem:[#allocation7 + $0xd8] sm:$0xff]  ;;  %vm111_vm0 = vcmp.lt.s32.totalorder %v526_v50, 1 }
  0x1a   :  { %v514_v15 = vsub.f32 %v90_v12, %v95_v9  ;;  %v516_v16 = vsub.f32 %v89_v13, %v94_v11  ;;  %267 = vmatpush.msra.mxu1 %v226_v25  ;;  %286 = vmatpush.msra.mxu2 %v243_v26  ;;  %v241_v32 = vld [vmem:[#allocation7 + $0x160] sm:$0xff]  ;;  %v208_v33 = vld [vmem:[#allocation7 + $0x58] sm:$0xff]  ;;  %v223_v34 = vld [vmem:[#allocation7 + $0xd0] sm:$0xff]  ;;  %vm121_vm1 = vcmp.lt.s32.totalorder %v526_v50, 127 }
  0x1b   :  { %v521_v19 = vsub.f32 %v91_v17, %v96_v18  ;;  %247 = vmatpush.msra.mxu0 %v210_v27  ;;  %v240_v35 = vld [vmem:[#allocation7 + $0x158] sm:$0xff]  ;;  %v207_v36 = vld [vmem:[#allocation7 + $0x50] sm:$0xff]  ;;  %v222_v37 = vld [vmem:[#allocation7 + $0xc8] sm:$0xff] }
  0x1c   :  { %105 = vrot.lane.b32.xlu0 %v514_v15, %s474_s2  ;;  %115 = vrot.lane.b32.xlu1 %v516_v16, %s475_s3  ;;  %v239_v38 = vld [vmem:[#allocation7 + $0x150] sm:$0xff]  ;;  %v206_v39 = vld [vmem:[#allocation7 + $0x48] sm:$0xff]  ;;  %v221_v40 = vld [vmem:[#allocation7 + $0xc0] sm:$0xff]  ;;  %v126_v5 = vmax.f32 %v514_v15, 0.0  ;;  %v125_v12 = vmax.f32 %v516_v16, 0.0 }
  0x1d   :  { %103 = vrot.lane.b32.xlu2 %v516_v16, %s474_s2  ;;  %268 = vmatpush.msra.mxu1 %v225_v28  ;;  %v238_v41 = vld [vmem:[#allocation7 + $0x148] sm:$0xff]  ;;  %v205_v43 = vld [vmem:[#allocation7 + $0x40] sm:$0xff]  ;;  %v220_v44 = vld [vmem:[#allocation7 + $0xb8] sm:$0xff]  ;;  %v127_v8 = vmax.f32 %v521_v19, 0.0 }
  0x1e   :  { %287 = vmatpush.msra.mxu2 %v242_v29  ;;  %248 = vmatpush.msra.mxu0 %v209_v30  ;;  %v237_v45 = vld [vmem:[#allocation7 + $0x140] sm:$0xff]  ;;  %v204_v46 = vld [vmem:[#allocation7 + $0x38] sm:$0xff]  ;;  %v219_v47 = vld [vmem:[#allocation7 + $0xb0] sm:$0xff]  ;;  %v135_v14 = vmul.f32 %v126_v5, %v126_v5 }
  0x1f   :  { %269 = vmatpush.msra.mxu1 %v224_v31  ;;  %v236_v48 = vld [vmem:[#allocation7 + $0x138] sm:$0xff]  ;;  %v203_v51 = vld [vmem:[#allocation7 + $0x30] sm:$0xff]  ;;  %v218_v52 = vld [vmem:[#allocation7 + $0xa8] sm:$0xff]  ;;  %v136_v18 = vmul.f32 %v127_v8, %v127_v8  ;;  %v134_v31 = vmul.f32 %v125_v12, %v125_v12 }
  0x20   :  { %288 = vmatpush.msra.mxu2 %v241_v32  ;;  %249 = vmatpush.msra.mxu0 %v208_v33  ;;  %v235_v53 = vld [vmem:[#allocation7 + $0x130] sm:$0xff]  ;;  %v202_v54 = vld [vmem:[#allocation7 + $0x28] sm:$0xff]  ;;  %v217_v55 = vld [vmem:[#allocation7 + $0xa0] sm:$0xff] }
  0x21   :  { %270 = vmatpush.msra.mxu1 %v223_v34  ;;  %v234_v56 = vld [vmem:[#allocation7 + $0x128] sm:$0xff]  ;;  %v201_v57 = vld [vmem:[#allocation7 + $0x20] sm:$0xff]  ;;  %v216_v58 = vld [vmem:[#allocation7 + $0x98] sm:$0xff] }
  0x22   :  { %289 = vmatpush.msra.mxu2 %v240_v35  ;;  %250 = vmatpush.msra.mxu0 %v207_v36  ;;  %v233_v59 = vld [vmem:[#allocation7 + $0x120] sm:$0xff]  ;;  %v200_v62 = vld [vmem:[#allocation7 + $0x18] sm:$0xff]  ;;  %v215_v63 = vld [vmem:[#allocation7 + $0x90] sm:$0xff] }
  0x23   :  { %271 = vmatpush.msra.mxu1 %v222_v37  ;;  %v232_v1 = vld [vmem:[#allocation7 + $0x118] sm:$0xff]  ;;  %v199_v2 = vld [vmem:[#allocation7 + $0x10] sm:$0xff]  ;;  %v214_v3 = vld [vmem:[#allocation7 + $0x88] sm:$0xff] }
  0x24   :  { %107 = vrot.lane.b32.xlu0 %v521_v19, %s474_s2  ;;  %119 = vrot.lane.b32.xlu1 %v521_v19, %s475_s3  ;;  %v231_v4 = vld [vmem:[#allocation7 + $0x110] sm:$0xff]  ;;  %v198_v9 = vld [vmem:[#allocation7 + $0x8] sm:$0xff]  ;;  %v213_v10 = vld [vmem:[#allocation7 + $0x80] sm:$0xff] }
  0x25   :  { %117 = vrot.lane.b32.xlu2 %v514_v15, %s475_s3  ;;  %290 = vmatpush.msra.mxu2 %v239_v38  ;;  %v230_v11 = vld [vmem:[#allocation7 + $0x108] sm:$0xff]  ;;  %v197_v22 = vld [vmem:[#allocation7] sm:$0xff] }
  0x26   :  { %251 = vmatpush.msra.mxu0 %v206_v39  ;;  %272 = vmatpush.msra.mxu1 %v221_v40  ;;  %v229_v23 = vld [vmem:[#allocation7 + $0x100] sm:$0xff] }
  0x27   :  { %291 = vmatpush.msra.mxu2 %v238_v41 }
  0x28   :  { %252 = vmatpush.msra.mxu0 %v205_v43  ;;  %273 = vmatpush.msra.mxu1 %v220_v44 }
  0x29   :  { %292 = vmatpush.msra.mxu2 %v237_v45 }
  0x2a   :  { %253 = vmatpush.msra.mxu0 %v204_v46  ;;  %274 = vmatpush.msra.mxu1 %v219_v47 }
  0x2b   :  { %293 = vmatpush.msra.mxu2 %v236_v48 }
  0x2c   :  { %254 = vmatpush.msra.mxu0 %v203_v51  ;;  %275 = vmatpush.msra.mxu1 %v218_v52 }
  0x2d   :  { %294 = vmatpush.msra.mxu2 %v235_v53 }
  0x2e   :  { %255 = vmatpush.msra.mxu0 %v202_v54  ;;  %276 = vmatpush.msra.mxu1 %v217_v55 }
  0x2f   :  { %295 = vmatpush.msra.mxu2 %v234_v56 }
  0x30   :  { %256 = vmatpush.msra.mxu0 %v201_v57  ;;  %277 = vmatpush.msra.mxu1 %v216_v58 }
  0x31   :  { %296 = vmatpush.msra.mxu2 %v233_v59 }
  0x32   :  { %257 = vmatpush.msra.mxu0 %v200_v62  ;;  %278 = vmatpush.msra.mxu1 %v215_v63 }
  0x33   :  { %297 = vmatpush.msra.mxu2 %v232_v1 }
  0x34   :  { %258 = vmatpush.msra.mxu0 %v199_v2  ;;  %279 = vmatpush.msra.mxu1 %v214_v3 }
  0x35   :  { %298 = vmatpush.msra.mxu2 %v231_v4 }
  0x36   :  { %259 = vmatpush.msra.mxu0 %v198_v9  ;;  %280 = vmatpush.msra.mxu1 %v213_v10 }
  0x37   :  { %299 = vmatpush.msra.mxu2 %v230_v11 }
  0x38   :  { %260 = vmatpush.msra.mxu0 %v197_v22 }
  0x39   :  { %300 = vmatpush.msra.mxu2 %v229_v23 }
  0x77   :  { %v104_v49 = vpop.permute.xlu2 %103 }
  0x7f   :  { %v118_v7 = vpop.permute.xlu2 %117 }
  0x8e   :  { %v106_v60 = vpop.permute.xlu0 %105  ;;  %v116_v61 = vpop.permute.xlu1 %115 }
  0x8f   :  { %v531_v0 = vsel %vm111_vm0, %v104_v49, %v106_v60  ;;  %v123_v13 = vsel %vm121_vm1, %v116_v61, %v118_v7 }
  0x90   :  { %v129_v6 = vmax.f32 %v531_v0, 0.0  ;;  %v131_v28 = vmax.f32 %v123_v13, 0.0  ;;  %v186_v54 = vmax.f32 %v514_v15, %v531_v0 }
  0x92   :  { %v138_v17 = vmul.f32 %v129_v6, %v129_v6  ;;  %v143_v38 = vmul.f32 %v131_v28, %v131_v28 }
  0x94   :  { %v141_v36 = vadd.f32 %v138_v17, %v135_v14 }
  0x96   :  { %v108_v20 = vpop.permute.xlu0 %107  ;;  %v120_v21 = vpop.permute.xlu1 %119 }
  0x97   :  { %v112_v24 = vsel %vm111_vm0, %v106_v60, %v108_v20  ;;  %v114_v25 = vsel %vm111_vm0, %v108_v20, %v104_v49  ;;  %v122_v26 = vsel %vm121_vm1, %v118_v7, %v120_v21  ;;  %v124_v27 = vsel %vm121_vm1, %v120_v21, %v116_v61 }
  0x98   :  { %v128_v29 = vmax.f32 %v114_v25, 0.0  ;;  %v130_v30 = vmax.f32 %v112_v24, 0.0  ;;  %v132_v32 = vmax.f32 %v122_v26, 0.0  ;;  %v133_v33 = vmax.f32 %v124_v27, 0.0 }
  0x99   :  { %v187_v49 = vmax.f32 %v521_v19, %v112_v24  ;;  %v185_v51 = vmax.f32 %v516_v16, %v114_v25  ;;  %v189_v58 = vmax.f32 %v186_v54, %v122_v26 }
  0x9a   :  { %v137_v34 = vmul.f32 %v128_v29, %v128_v29  ;;  %v139_v35 = vmul.f32 %v130_v30, %v130_v30  ;;  %v144_v37 = vmul.f32 %v132_v32, %v132_v32  ;;  %v145_v41 = vmul.f32 %v133_v33, %v133_v33 }
  0x9b   :  { %v190_v59 = vmax.f32 %v187_v49, %v124_v27  ;;  %v188_v62 = vmax.f32 %v185_v51, %v123_v13  ;;  %v192_v3 = vmin.f32 %v189_v58, 0.0 }
  0x9c   :  { %v140_v39 = vadd.f32 %v137_v34, %v134_v31  ;;  %v142_v40 = vadd.f32 %v139_v35, %v136_v18  ;;  %v147_v42 = vadd.f32 %v144_v37, %v141_v36 }
  0x9d   :  { %v193_v4 = vmin.f32 %v190_v59, 0.0  ;;  %v191_v6 = vmin.f32 %v188_v62, 0.0 }
  0x9e   :  { %v146_v43 = vadd.f32 %v143_v38, %v140_v39  ;;  %v148_v44 = vadd.f32 %v145_v41, %v142_v40  ;;  %334 = vrsqrt.f32 %v147_v42  ;;  %vm168_vm2 = vcmp.eq.f32.partialorder %v147_v42, inf }
  0x9f   :  { %vm170_vm3 = vcmp.eq.f32.partialorder %v147_v42, 0.0  ;;  %v171_v15 = vand.u32 2147483648, %v147_v42 }
  0xa0   :  { %336 = vrsqrt.f32 %v146_v43  ;;  %vm156_vm4 = vcmp.eq.f32.partialorder %v146_v43, inf  ;;  %vm158_vm5 = vcmp.eq.f32.partialorder %v146_v43, 0.0  ;;  %v159_v9 = vand.u32 2147483648, %v146_v43 }
  0xa1   :  { %338 = vrsqrt.f32 %v148_v44  ;;  %vm180_vm6 = vcmp.eq.f32.partialorder %v148_v44, inf  ;;  %v183_v13 = vand.u32 2147483648, %v148_v44  ;;  %vm182_vm7 = vcmp.eq.f32.partialorder %v148_v44, 0.0 }
  0xa4   :  { %v335_v45 = vpop.eup %334 }
  0xa5   :  { %v162_v47 = vmul.f32 %v335_v45, %v147_v42 }
  0xa6   :  { %v337_v46 = vpop.eup %336 }
  0xa7   :  { %v339_v48 = vpop.eup %338  ;;  %v150_v50 = vmul.f32 %v337_v46, %v146_v43  ;;  %v163_v52 = vmul.f32 %v335_v45, %v162_v47 }
  0xa8   :  { %v174_v53 = vmul.f32 %v339_v48, %v148_v44 }
  0xa9   :  { %v151_v55 = vmul.f32 %v337_v46, %v150_v50  ;;  %v164_v56 = vmul.f32 0.5, %v163_v52 }
  0xaa   :  { %v175_v57 = vmul.f32 %v339_v48, %v174_v53 }
  0xab   :  { %v152_v60 = vmul.f32 0.5, %v151_v55  ;;  %v165_v61 = vsub.f32 1.5, %v164_v56 }
  0xac   :  { %v176_v63 = vmul.f32 0.5, %v175_v57 }
  0xad   :  { %v153_v1 = vsub.f32 1.5, %v152_v60  ;;  %v166_v2 = vmul.f32 %v335_v45, %v165_v61 }
  0xae   :  { %v177_v19 = vsub.f32 1.5, %v176_v63 }
  0xaf   :  { %v154_v16 = vmul.f32 %v337_v46, %v153_v1  ;;  %v167_v5 = vmul.f32 %v166_v2, %v147_v42 }
  0xb0   :  { %v178_v7 = vmul.f32 %v339_v48, %v177_v19 }
  0xb1   :  { %v155_v0 = vmul.f32 %v154_v16, %v146_v43  ;;  %v169_v8 = vsel %vm168_vm2, %v147_v42, %v167_v5 }
  0xb2   :  { %v179_v10 = vmul.f32 %v178_v7, %v148_v44  ;;  %v172_v11 = vsel %vm170_vm3, %v171_v15, %v169_v8 }
  0xb3   :  { %v157_v12 = vsel %vm156_vm4, %v146_v43, %v155_v0  ;;  %v195_v14 = vadd.f32 %v192_v3, %v172_v11 }
  0xb4   :  { %v160_v17 = vsel %vm158_vm5, %v159_v9, %v157_v12  ;;  %v181_v18 = vsel %vm180_vm6, %v148_v44, %v179_v10 }
  0xb5   :  { %v194_v20 = vadd.f32 %v191_v6, %v160_v17  ;;  %v184_v21 = vsel %vm182_vm7, %v183_v13, %v181_v18  ;;  %281 = vmatmul.f32.vlgmr.msra.gmra.mxu1 %v195_v14 }
  0xb6   :  { %v196_v22 = vadd.f32 %v193_v4, %v184_v21 }
  0xb7   :  { %261 = vmatmul.f32.vlgmr.msra.gmra.mxu0 %v194_v20 }
  0xb8   :  { %301 = vmatmul.f32.vlgmr.msra.gmra.mxu2 %v196_v22 }
 0x132   :  { %v282_v24 = vpop.f32.mrf.mxu1 }
 0x134   :  { %v262_v23 = vpop.f32.mrf.mxu0 }
 0x135   :  { %v283_v25 = vadd.f32 %v282_v24, %v262_v23 }
 0x13b   :  { %v302_v26 = vpop.f32.mrf.mxu2 }
 0x13c   :  { %v303_v27 = vadd.f32 %v302_v26, %v283_v25 }
 0x13e   :  { %305 = vst [vmem:[#allocation10] sm:$0xff] %v303_v27 }
 0x13f   :  { %316 = dma.vmem_to_hbm [thread:$0]  %s312_s10, 128, %s314_s13, [#allocation4]  }
 0x140   :  { %466 = dma.done.wait [#allocation4], 128  }
 0x141   :  { %467 = vsyncadd [#allocation4], 4294967168 }
 0x142   :  { %321 = vsyncpa [#allocation3], 1 }
 0x143   :  { %322 = vsyncpa [#allocation6], 1 }
 0x144   :  { %323 = vsyncpa [#allocation9], 1 }
 0x145   :  { %324 = vsyncpa [#allocation4], 1 }

</bundles_post_ra>
